<compile_context>
chip_gen: v7x
topology: tpu7x:2x2x1
jax: 0.10.0
libtpu: 0.0.40
codegen_flags: <defaults>
</compile_context>

<pallas_src>
import numpy as np
import jax
import jax.numpy as jnp
from jax.experimental import pallas as pl
from jax.experimental.pallas import tpu as pltpu  # noqa: F401  (kept for TPU-specific tuning)


def _att_loc_fused_kernel(enc_ref, dec_ref, ap_pad_ref,
                          wenc_ref, benc_ref, wdec_ref,
                          m_ref, gv_ref, wo_ref, bo_ref,
                          w_out_ref, c_out_ref):
    B, T, E = enc_ref.shape
    H, KW, A = m_ref.shape
    O = wo_ref.shape[-1]

    enc = enc_ref[...]                                        # (B, T, E)
    enc2d = enc.reshape(B * T, E)

    # --- fused projections for all heads (lane dim = H*A, one MXU pass each) ---
    pre = jnp.dot(enc2d, wenc_ref[...],
                  preferred_element_type=jnp.float32) + benc_ref[...]       # (B*T, H*A)
    pre = pre.reshape(B, T, H * A)
    decp = jnp.dot(dec_ref[...], wdec_ref[...],
                   preferred_element_type=jnp.float32)                      # (B, H*A)

    # output accumulator, initialized with the mlp_o bias (hoisted broadcast)
    c_acc = jnp.broadcast_to(bo_ref[...], (B, O)).astype(jnp.float32)       # (B, O)

    for h in range(H):                                        # static unroll, H is small
        ap_pad = ap_pad_ref[h]                                # (B, T + 2K), zero-padded

        # location conv folded with mlp_att:
        #   attc[b, t, a] = sum_j ap_pad[b, t + j] * M[h, j, a]
        attc = jnp.zeros((B, T, A), jnp.float32)
        for j in range(KW):                                   # static unroll (KW small)
            shifted = ap_pad[:, j:j + T]                      # (B, T)
            attc = attc + shifted[:, :, None] * m_ref[h, j][None, None, :]

        lo = h * A
        att_state = jnp.tanh(pre[:, :, lo:lo + A]
                             + decp[:, None, lo:lo + A]
                             + attc)                                        # (B, T, A)

        # energies (softmax scaling already folded into gv) + softmax over T
        e = jnp.sum(att_state * gv_ref[h][None, None, :], axis=-1)          # (B, T)
        e = e - jnp.max(e, axis=1, keepdims=True)
        ex = jnp.exp(e)
        w = ex / jnp.sum(ex, axis=1, keepdims=True)                         # (B, T)
        w_out_ref[h] = w

        # context on the MXU:  c_h = bmm(w[:, None, :], enc)  -> (B, E)
        c_h = jax.lax.dot_general(
            w[:, None, :], enc,
            dimension_numbers=(((2,), (1,)), ((0,), (0,))),
            preferred_element_type=jnp.float32)[:, 0, :]                    # (B, E)

        # this head's slice of mlp_o, accumulated in-register
        c_acc = c_acc + jnp.dot(c_h, wo_ref[h],
                                preferred_element_type=jnp.float32)         # (B, O)

    c_out_ref[...] = c_acc


def multi_head_att_loc(enc_pad, dec_z, att_prev, params, scaling=2.0):
    """enc_pad: (B,T,E), dec_z: (B,D), att_prev: (H,B,T).

    Returns (c: (B,O), ws: (H,B,T) stacked attention weights)."""
    B, T, E = enc_pad.shape
    H, _, A = params["w_enc"].shape
    D = params["w_dec"].shape[1]
    KW = params["conv_w"].shape[2]
    K = (KW - 1) // 2
    O = params["w_o"].shape[-1]

    # --- one-time wrapper-side weight restructuring (plain XLA, outside the kernel) ---
    # stack per-head projection weights along the output (lane) dim
    w_enc_s = jnp.transpose(params["w_enc"], (1, 0, 2)).reshape(E, H * A)
    b_enc_s = jnp.transpose(params["b_enc"], (1, 0, 2)).reshape(1, H * A)
    w_dec_s = jnp.transpose(params["w_dec"], (1, 0, 2)).reshape(D, H * A)
    # fold the location conv with mlp_att: M[h, j, a] = sum_c conv_w[h, c, j] * w_att[h, c, a]
    m_fold = jnp.einsum("hcj,hca->hja", params["conv_w"], params["w_att"])
    # fold the softmax scaling into gvec
    gv_scaled = scaling * params["gvec"][:, :, 0]                           # (H, A)
    # zero-pad att_prev once (conv "same" padding), avoids an in-kernel concatenate copy
    ap_padded = jnp.pad(att_prev, ((0, 0), (0, 0), (K, K)))                 # (H, B, T+2K)

    ws, c = pl.pallas_call(
        _att_loc_fused_kernel,
        out_shape=(jax.ShapeDtypeStruct((H, B, T), jnp.float32),
                   jax.ShapeDtypeStruct((B, O), jnp.float32)),
    )(enc_pad, dec_z, ap_padded,
      w_enc_s, b_enc_s, w_dec_s,
      m_fold, gv_scaled, params["w_o"], params["b_o"])
    return c, ws


def reference_forward(enc_pad, dec_z, att_prev, p, scaling=2.0):
    """Pure-JAX reference mirroring the PyTorch AttLoc forward exactly (per head)."""
    B, T, E = enc_pad.shape
    H = p["w_enc"].shape[0]
    KW = p["conv_w"].shape[-1]
    K = (KW - 1) // 2
    cs, ws = [], []
    for h in range(H):
        ap = att_prev[h]                                              # (B, T)
        conv_out = jax.lax.conv_general_dilated(
            ap[:, None, :], p["conv_w"][h][:, None, :],
            window_strides=(1,), padding=[(K, K)],
            dimension_numbers=("NCH", "OIH", "NCH"))                  # (B, C, T)
        att_conv = jnp.transpose(conv_out, (0, 2, 1)) @ p["w_att"][h]  # (B, T, A)
        pre = enc_pad @ p["w_enc"][h] + p["b_enc"][h]                  # (B, T, A)
        dec_t = (dec_z @ p["w_dec"][h])[:, None, :]                    # (B, 1, A)
        att_state = jnp.tanh(pre + dec_t + att_conv)
        e = (att_state @ p["gvec"][h])[..., 0]                         # (B, T)
        w = jax.nn.softmax(scaling * e, axis=1)
        ws.append(w)
        cs.append(jnp.einsum("bt,bte->be", w, enc_pad))
    c = jnp.concatenate(cs, axis=1) @ p["w_o"].reshape(H * E, -1) + p["b_o"][0]
    return c, ws


def init_params(key, E, D, A, C, K, H, O):
    ks = jax.random.split(key, 8)
    s = 0.1
    return dict(
        w_enc=jax.random.normal(ks[0], (H, E, A), jnp.float32) * s,
        b_enc=jax.random.normal(ks[1], (H, 1, A), jnp.float32) * s,
        w_dec=jax.random.normal(ks[2], (H, D, A), jnp.float32) * s,
        w_att=jax.random.normal(ks[3], (H, C, A), jnp.float32) * s,
        conv_w=jax.random.normal(ks[4], (H, C, 2 * K + 1), jnp.float32) * s,
        gvec=jax.random.normal(ks[5], (H, A, 1), jnp.float32) * s,
        w_o=jax.random.normal(ks[6], (H, E, O), jnp.float32) * s,   # mlp_o weight.T split by head
        b_o=jax.random.normal(ks[7], (1, O), jnp.float32) * s,
    )


if __name__ == "__main__":
    # small shapes consistent with the module
    B, T = 2, 16                       # batch, encoder time steps
    E, D, A = 32, 32, 32               # encoder_dim, decoder_dim, att_dim
    C, K, H, O = 4, 2, 2, 32           # conv_channels, conv_kernel_size, heads, att_odim

    key = jax.random.PRNGKey(0)
    kp, ke, kd = jax.random.split(key, 3)
    params = init_params(kp, E, D, A, C, K, H, O)

    enc_pad = jax.random.normal(ke, (B, T, E), jnp.float32)
    dec_z = jax.random.normal(kd, (B, D), jnp.float32)
    enc_len = [16, 12]

    # att_prev=None path of the PyTorch module: uniform 1/len, zero padded (same per head)
    ap = np.zeros((B, T), np.float32)
    for b, l in enumerate(enc_len):
        ap[b, :l] = 1.0 / l
    att_prev = jnp.array(np.broadcast_to(ap, (H, B, T)))

    c, ws = multi_head_att_loc(enc_pad, dec_z, att_prev, params)
    jax.block_until_ready(c)

    c_ref, ws_ref = reference_forward(enc_pad, dec_z, att_prev, params)
    np.testing.assert_allclose(np.asarray(c), np.asarray(c_ref), rtol=5e-3, atol=1e-4)
    ws_np = np.asarray(ws)
    for h in range(H):
        np.testing.assert_allclose(ws_np[h], np.asarray(ws_ref[h]),
                                   rtol=5e-3, atol=1e-4)
    print("KERNEL_OK")
</pallas_src>

<mosaic_0001>
module attributes {stable_mosaic.version = 11 : i64} {
  func.func @_att_loc_fused_kernel(%arg0: memref<2x16x32xf32, #tpu.memory_space<vmem>>, %arg1: memref<2x32xf32, #tpu.memory_space<vmem>>, %arg2: memref<2x2x20xf32, #tpu.memory_space<vmem>>, %arg3: memref<32x64xf32, #tpu.memory_space<vmem>>, %arg4: memref<1x64xf32, #tpu.memory_space<vmem>>, %arg5: memref<32x64xf32, #tpu.memory_space<vmem>>, %arg6: memref<2x5x32xf32, #tpu.memory_space<vmem>>, %arg7: memref<2x32xf32, #tpu.memory_space<vmem>>, %arg8: memref<2x32x32xf32, #tpu.memory_space<vmem>>, %arg9: memref<1x32xf32, #tpu.memory_space<vmem>>, %arg10: memref<2x2x16xf32, #tpu.memory_space<vmem>>, %arg11: memref<2x32xf32, #tpu.memory_space<vmem>>) attributes {dimension_semantics = [], scalar_prefetch = 0 : i64, scratch_operands = 0 : i64, tpu.core_type = #tpu.core_type<tc>} {
    %c0 = arith.constant 0 : index
    %c0_0 = arith.constant 0 : index
    %c0_1 = arith.constant 0 : index
    %0 = vector.load %arg0[%c0, %c0_0, %c0_1] : memref<2x16x32xf32, #tpu.memory_space<vmem>>, vector<2x16x32xf32>
    %1 = vector.shape_cast %0 : vector<2x16x32xf32> to vector<32x32xf32>
    %c0_2 = arith.constant 0 : index
    %c0_3 = arith.constant 0 : index
    %2 = vector.load %arg3[%c0_2, %c0_3] : memref<32x64xf32, #tpu.memory_space<vmem>>, vector<32x64xf32>
    %cst = arith.constant dense<0.000000e+00> : vector<32x64xf32>
    %3 = tpu.matmul %1, %2, %cst {dimension_numbers = #tpu.dot_dimension_numbers<[1], [0], [0], [1], [0, 0, 1, 1], [], []>} : vector<32x32xf32>, vector<32x64xf32>, vector<32x64xf32> -> vector<32x64xf32>
    %c0_4 = arith.constant 0 : index
    %c0_5 = arith.constant 0 : index
    %4 = vector.load %arg4[%c0_4, %c0_5] : memref<1x64xf32, #tpu.memory_space<vmem>>, vector<1x64xf32>
    %5 = vector.broadcast %4 : vector<1x64xf32> to vector<32x64xf32>
    %6 = arith.addf %3, %5 : vector<32x64xf32>
    %7 = vector.shape_cast %6 : vector<32x64xf32> to vector<2x16x64xf32>
    %c0_6 = arith.constant 0 : index
    %c0_7 = arith.constant 0 : index
    %8 = vector.load %arg1[%c0_6, %c0_7] : memref<2x32xf32, #tpu.memory_space<vmem>>, vector<2x32xf32>
    %c0_8 = arith.constant 0 : index
    %c0_9 = arith.constant 0 : index
    %9 = vector.load %arg5[%c0_8, %c0_9] : memref<32x64xf32, #tpu.memory_space<vmem>>, vector<32x64xf32>
    %cst_10 = arith.constant dense<0.000000e+00> : vector<2x64xf32>
    %10 = tpu.matmul %8, %9, %cst_10 {dimension_numbers = #tpu.dot_dimension_numbers<[1], [0], [0], [1], [0, 0, 1, 1], [], []>} : vector<2x32xf32>, vector<32x64xf32>, vector<2x64xf32> -> vector<2x64xf32>
    %c0_11 = arith.constant 0 : index
    %c0_12 = arith.constant 0 : index
    %11 = vector.load %arg9[%c0_11, %c0_12] : memref<1x32xf32, #tpu.memory_space<vmem>>, vector<1x32xf32>
    %12 = vector.shape_cast %11 : vector<1x32xf32> to vector<1x32xf32>
    %13 = vector.broadcast %12 : vector<1x32xf32> to vector<2x32xf32>
    %c0_13 = arith.constant 0 : index
    %c0_14 = arith.constant 0 : index
    %c0_15 = arith.constant 0 : index
    %14 = vector.load %arg2[%c0_13, %c0_14, %c0_15] : memref<2x2x20xf32, #tpu.memory_space<vmem>>, vector<1x2x20xf32>
    %15 = vector.shape_cast %14 : vector<1x2x20xf32> to vector<2x20xf32>
    %cst_16 = arith.constant 0.000000e+00 : f32
    %16 = vector.broadcast %cst_16 : f32 to vector<2x16x32xf32>
    %17 = vector.extract_strided_slice %15 {offsets = [0, 0], sizes = [2, 16], strides = [1, 1]} : vector<2x20xf32> to vector<2x16xf32>
    %18 = vector.shape_cast %17 : vector<2x16xf32> to vector<2x16x1xf32>
    %c0_17 = arith.constant 0 : index
    %c0_18 = arith.constant 0 : index
    %c0_19 = arith.constant 0 : index
    %19 = vector.load %arg6[%c0_17, %c0_18, %c0_19] : memref<2x5x32xf32, #tpu.memory_space<vmem>>, vector<1x1x32xf32>
    %20 = vector.shape_cast %19 : vector<1x1x32xf32> to vector<32xf32>
    %21 = vector.shape_cast %20 : vector<32xf32> to vector<1x1x32xf32>
    %22 = vector.broadcast %18 : vector<2x16x1xf32> to vector<2x16x32xf32>
    %23 = vector.broadcast %21 : vector<1x1x32xf32> to vector<2x16x32xf32>
    %24 = arith.mulf %22, %23 : vector<2x16x32xf32>
    %25 = arith.addf %16, %24 : vector<2x16x32xf32>
    %26 = vector.extract_strided_slice %15 {offsets = [0, 1], sizes = [2, 16], strides = [1, 1]} : vector<2x20xf32> to vector<2x16xf32>
    %27 = vector.shape_cast %26 : vector<2x16xf32> to vector<2x16x1xf32>
    %c0_20 = arith.constant 0 : index
    %c1 = arith.constant 1 : index
    %c0_21 = arith.constant 0 : index
    %28 = vector.load %arg6[%c0_20, %c1, %c0_21] : memref<2x5x32xf32, #tpu.memory_space<vmem>>, vector<1x1x32xf32>
    %29 = vector.shape_cast %28 : vector<1x1x32xf32> to vector<32xf32>
    %30 = vector.shape_cast %29 : vector<32xf32> to vector<1x1x32xf32>
    %31 = vector.broadcast %27 : vector<2x16x1xf32> to vector<2x16x32xf32>
    %32 = vector.broadcast %30 : vector<1x1x32xf32> to vector<2x16x32xf32>
    %33 = arith.mulf %31, %32 : vector<2x16x32xf32>
    %34 = arith.addf %25, %33 : vector<2x16x32xf32>
    %35 = vector.extract_strided_slice %15 {offsets = [0, 2], sizes = [2, 16], strides = [1, 1]} : vector<2x20xf32> to vector<2x16xf32>
    %36 = vector.shape_cast %35 : vector<2x16xf32> to vector<2x16x1xf32>
    %c0_22 = arith.constant 0 : index
    %c2 = arith.constant 2 : index
    %c0_23 = arith.constant 0 : index
    %37 = vector.load %arg6[%c0_22, %c2, %c0_23] : memref<2x5x32xf32, #tpu.memory_space<vmem>>, vector<1x1x32xf32>
    %38 = vector.shape_cast %37 : vector<1x1x32xf32> to vector<32xf32>
    %39 = vector.shape_cast %38 : vector<32xf32> to vector<1x1x32xf32>
    %40 = vector.broadcast %36 : vector<2x16x1xf32> to vector<2x16x32xf32>
    %41 = vector.broadcast %39 : vector<1x1x32xf32> to vector<2x16x32xf32>
    %42 = arith.mulf %40, %41 : vector<2x16x32xf32>
    %43 = arith.addf %34, %42 : vector<2x16x32xf32>
    %44 = vector.extract_strided_slice %15 {offsets = [0, 3], sizes = [2, 16], strides = [1, 1]} : vector<2x20xf32> to vector<2x16xf32>
    %45 = vector.shape_cast %44 : vector<2x16xf32> to vector<2x16x1xf32>
    %c0_24 = arith.constant 0 : index
    %c3 = arith.constant 3 : index
    %c0_25 = arith.constant 0 : index
    %46 = vector.load %arg6[%c0_24, %c3, %c0_25] : memref<2x5x32xf32, #tpu.memory_space<vmem>>, vector<1x1x32xf32>
    %47 = vector.shape_cast %46 : vector<1x1x32xf32> to vector<32xf32>
    %48 = vector.shape_cast %47 : vector<32xf32> to vector<1x1x32xf32>
    %49 = vector.broadcast %45 : vector<2x16x1xf32> to vector<2x16x32xf32>
    %50 = vector.broadcast %48 : vector<1x1x32xf32> to vector<2x16x32xf32>
    %51 = arith.mulf %49, %50 : vector<2x16x32xf32>
    %52 = arith.addf %43, %51 : vector<2x16x32xf32>
    %53 = vector.extract_strided_slice %15 {offsets = [0, 4], sizes = [2, 16], strides = [1, 1]} : vector<2x20xf32> to vector<2x16xf32>
    %54 = vector.shape_cast %53 : vector<2x16xf32> to vector<2x16x1xf32>
    %c0_26 = arith.constant 0 : index
    %c4 = arith.constant 4 : index
    %c0_27 = arith.constant 0 : index
    %55 = vector.load %arg6[%c0_26, %c4, %c0_27] : memref<2x5x32xf32, #tpu.memory_space<vmem>>, vector<1x1x32xf32>
    %56 = vector.shape_cast %55 : vector<1x1x32xf32> to vector<32xf32>
    %57 = vector.shape_cast %56 : vector<32xf32> to vector<1x1x32xf32>
    %58 = vector.broadcast %54 : vector<2x16x1xf32> to vector<2x16x32xf32>
    %59 = vector.broadcast %57 : vector<1x1x32xf32> to vector<2x16x32xf32>
    %60 = arith.mulf %58, %59 : vector<2x16x32xf32>
    %61 = arith.addf %52, %60 : vector<2x16x32xf32>
    %62 = vector.extract_strided_slice %7 {offsets = [0, 0, 0], sizes = [2, 16, 32], strides = [1, 1, 1]} : vector<2x16x64xf32> to vector<2x16x32xf32>
    %63 = vector.extract_strided_slice %10 {offsets = [0, 0], sizes = [2, 32], strides = [1, 1]} : vector<2x64xf32> to vector<2x32xf32>
    %64 = vector.shape_cast %63 : vector<2x32xf32> to vector<2x1x32xf32>
    %65 = vector.broadcast %64 : vector<2x1x32xf32> to vector<2x16x32xf32>
    %66 = arith.addf %62, %65 : vector<2x16x32xf32>
    %67 = arith.addf %66, %61 : vector<2x16x32xf32>
    %68 = math.tanh %67 : vector<2x16x32xf32>
    %c0_28 = arith.constant 0 : index
    %c0_29 = arith.constant 0 : index
    %69 = vector.load %arg7[%c0_28, %c0_29] : memref<2x32xf32, #tpu.memory_space<vmem>>, vector<1x32xf32>
    %70 = vector.shape_cast %69 : vector<1x32xf32> to vector<32xf32>
    %71 = vector.shape_cast %70 : vector<32xf32> to vector<1x1x32xf32>
    %72 = vector.broadcast %71 : vector<1x1x32xf32> to vector<2x16x32xf32>
    %73 = arith.mulf %68, %72 : vector<2x16x32xf32>
    %cst_30 = arith.constant dense<0.000000e+00> : vector<2x16xf32>
    %74 = vector.multi_reduction <add>, %73, %cst_30 [2] : vector<2x16x32xf32> to vector<2x16xf32>
    %cst_31 = arith.constant dense<0xFF800000> : vector<2xf32>
    %75 = vector.multi_reduction <maximumf>, %74, %cst_31 [1] : vector<2x16xf32> to vector<2xf32>
    %76 = vector.shape_cast %75 : vector<2xf32> to vector<2x1xf32>
    %77 = vector.broadcast %76 : vector<2x1xf32> to vector<2x16xf32>
    %78 = arith.subf %74, %77 : vector<2x16xf32>
    %79 = math.exp %78 : vector<2x16xf32>
    %cst_32 = arith.constant dense<0.000000e+00> : vector<2xf32>
    %80 = vector.multi_reduction <add>, %79, %cst_32 [1] : vector<2x16xf32> to vector<2xf32>
    %81 = vector.shape_cast %80 : vector<2xf32> to vector<2x1xf32>
    %82 = vector.broadcast %81 : vector<2x1xf32> to vector<2x16xf32>
    %83 = arith.divf %79, %82 : vector<2x16xf32>
    %c0_33 = arith.constant 0 : index
    %c0_34 = arith.constant 0 : index
    %c0_35 = arith.constant 0 : index
    %84 = vector.load %arg10[%c0_33, %c0_34, %c0_35] : memref<2x2x16xf32, #tpu.memory_space<vmem>>, vector<1x2x16xf32>
    %85 = vector.shape_cast %84 : vector<1x2x16xf32> to vector<2x16xf32>
    %86 = vector.shape_cast %83 : vector<2x16xf32> to vector<1x2x16xf32>
    tpu.vector_store %arg10[%c0_33, %c0_34, %c0_35], %86 {strides = array<i32>} : memref<2x2x16xf32, #tpu.memory_space<vmem>>, vector<1x2x16xf32>,
    %87 = vector.shape_cast %83 : vector<2x16xf32> to vector<2x1x16xf32>
    %cst_36 = arith.constant dense<0.000000e+00> : vector<2x1x32xf32>
    %88 = tpu.matmul %87, %0, %cst_36 {dimension_numbers = #tpu.dot_dimension_numbers<[2], [1], [1], [2], [0, 0, 0, 1, 1, 2], [0], [0]>} : vector<2x1x16xf32>, vector<2x16x32xf32>, vector<2x1x32xf32> -> vector<2x1x32xf32>
    %89 = vector.shape_cast %88 : vector<2x1x32xf32> to vector<2x32xf32>
    %c0_37 = arith.constant 0 : index
    %c0_38 = arith.constant 0 : index
    %c0_39 = arith.constant 0 : index
    %90 = vector.load %arg8[%c0_37, %c0_38, %c0_39] : memref<2x32x32xf32, #tpu.memory_space<vmem>>, vector<1x32x32xf32>
    %91 = vector.shape_cast %90 : vector<1x32x32xf32> to vector<32x32xf32>
    %cst_40 = arith.constant dense<0.000000e+00> : vector<2x32xf32>
    %92 = tpu.matmul %89, %91, %cst_40 {dimension_numbers = #tpu.dot_dimension_numbers<[1], [0], [0], [1], [0, 0, 1, 1], [], []>} : vector<2x32xf32>, vector<32x32xf32>, vector<2x32xf32> -> vector<2x32xf32>
    %93 = arith.addf %13, %92 : vector<2x32xf32>
    %c1_41 = arith.constant 1 : index
    %c0_42 = arith.constant 0 : index
    %c0_43 = arith.constant 0 : index
    %94 = vector.load %arg2[%c1_41, %c0_42, %c0_43] : memref<2x2x20xf32, #tpu.memory_space<vmem>>, vector<1x2x20xf32>
    %95 = vector.shape_cast %94 : vector<1x2x20xf32> to vector<2x20xf32>
    %cst_44 = arith.constant 0.000000e+00 : f32
    %96 = vector.broadcast %cst_44 : f32 to vector<2x16x32xf32>
    %97 = vector.extract_strided_slice %95 {offsets = [0, 0], sizes = [2, 16], strides = [1, 1]} : vector<2x20xf32> to vector<2x16xf32>
    %98 = vector.shape_cast %97 : vector<2x16xf32> to vector<2x16x1xf32>
    %c1_45 = arith.constant 1 : index
    %c0_46 = arith.constant 0 : index
    %c0_47 = arith.constant 0 : index
    %99 = vector.load %arg6[%c1_45, %c0_46, %c0_47] : memref<2x5x32xf32, #tpu.memory_space<vmem>>, vector<1x1x32xf32>
    %100 = vector.shape_cast %99 : vector<1x1x32xf32> to vector<32xf32>
    %101 = vector.shape_cast %100 : vector<32xf32> to vector<1x1x32xf32>
    %102 = vector.broadcast %98 : vector<2x16x1xf32> to vector<2x16x32xf32>
    %103 = vector.broadcast %101 : vector<1x1x32xf32> to vector<2x16x32xf32>
    %104 = arith.mulf %102, %103 : vector<2x16x32xf32>
    %105 = arith.addf %96, %104 : vector<2x16x32xf32>
    %106 = vector.extract_strided_slice %95 {offsets = [0, 1], sizes = [2, 16], strides = [1, 1]} : vector<2x20xf32> to vector<2x16xf32>
    %107 = vector.shape_cast %106 : vector<2x16xf32> to vector<2x16x1xf32>
    %c1_48 = arith.constant 1 : index
    %c1_49 = arith.constant 1 : index
    %c0_50 = arith.constant 0 : index
    %108 = vector.load %arg6[%c1_48, %c1_49, %c0_50] : memref<2x5x32xf32, #tpu.memory_space<vmem>>, vector<1x1x32xf32>
    %109 = vector.shape_cast %108 : vector<1x1x32xf32> to vector<32xf32>
    %110 = vector.shape_cast %109 : vector<32xf32> to vector<1x1x32xf32>
    %111 = vector.broadcast %107 : vector<2x16x1xf32> to vector<2x16x32xf32>
    %112 = vector.broadcast %110 : vector<1x1x32xf32> to vector<2x16x32xf32>
    %113 = arith.mulf %111, %112 : vector<2x16x32xf32>
    %114 = arith.addf %105, %113 : vector<2x16x32xf32>
    %115 = vector.extract_strided_slice %95 {offsets = [0, 2], sizes = [2, 16], strides = [1, 1]} : vector<2x20xf32> to vector<2x16xf32>
    %116 = vector.shape_cast %115 : vector<2x16xf32> to vector<2x16x1xf32>
    %c1_51 = arith.constant 1 : index
    %c2_52 = arith.constant 2 : index
    %c0_53 = arith.constant 0 : index
    %117 = vector.load %arg6[%c1_51, %c2_52, %c0_53] : memref<2x5x32xf32, #tpu.memory_space<vmem>>, vector<1x1x32xf32>
    %118 = vector.shape_cast %117 : vector<1x1x32xf32> to vector<32xf32>
    %119 = vector.shape_cast %118 : vector<32xf32> to vector<1x1x32xf32>
    %120 = vector.broadcast %116 : vector<2x16x1xf32> to vector<2x16x32xf32>
    %121 = vector.broadcast %119 : vector<1x1x32xf32> to vector<2x16x32xf32>
    %122 = arith.mulf %120, %121 : vector<2x16x32xf32>
    %123 = arith.addf %114, %122 : vector<2x16x32xf32>
    %124 = vector.extract_strided_slice %95 {offsets = [0, 3], sizes = [2, 16], strides = [1, 1]} : vector<2x20xf32> to vector<2x16xf32>
    %125 = vector.shape_cast %124 : vector<2x16xf32> to vector<2x16x1xf32>
    %c1_54 = arith.constant 1 : index
    %c3_55 = arith.constant 3 : index
    %c0_56 = arith.constant 0 : index
    %126 = vector.load %arg6[%c1_54, %c3_55, %c0_56] : memref<2x5x32xf32, #tpu.memory_space<vmem>>, vector<1x1x32xf32>
    %127 = vector.shape_cast %126 : vector<1x1x32xf32> to vector<32xf32>
    %128 = vector.shape_cast %127 : vector<32xf32> to vector<1x1x32xf32>
    %129 = vector.broadcast %125 : vector<2x16x1xf32> to vector<2x16x32xf32>
    %130 = vector.broadcast %128 : vector<1x1x32xf32> to vector<2x16x32xf32>
    %131 = arith.mulf %129, %130 : vector<2x16x32xf32>
    %132 = arith.addf %123, %131 : vector<2x16x32xf32>
    %133 = vector.extract_strided_slice %95 {offsets = [0, 4], sizes = [2, 16], strides = [1, 1]} : vector<2x20xf32> to vector<2x16xf32>
    %134 = vector.shape_cast %133 : vector<2x16xf32> to vector<2x16x1xf32>
    %c1_57 = arith.constant 1 : index
    %c4_58 = arith.constant 4 : index
    %c0_59 = arith.constant 0 : index
    %135 = vector.load %arg6[%c1_57, %c4_58, %c0_59] : memref<2x5x32xf32, #tpu.memory_space<vmem>>, vector<1x1x32xf32>
    %136 = vector.shape_cast %135 : vector<1x1x32xf32> to vector<32xf32>
    %137 = vector.shape_cast %136 : vector<32xf32> to vector<1x1x32xf32>
    %138 = vector.broadcast %134 : vector<2x16x1xf32> to vector<2x16x32xf32>
    %139 = vector.broadcast %137 : vector<1x1x32xf32> to vector<2x16x32xf32>
    %140 = arith.mulf %138, %139 : vector<2x16x32xf32>
    %141 = arith.addf %132, %140 : vector<2x16x32xf32>
    %142 = vector.extract_strided_slice %7 {offsets = [0, 0, 32], sizes = [2, 16, 32], strides = [1, 1, 1]} : vector<2x16x64xf32> to vector<2x16x32xf32>
    %143 = vector.extract_strided_slice %10 {offsets = [0, 32], sizes = [2, 32], strides = [1, 1]} : vector<2x64xf32> to vector<2x32xf32>
    %144 = vector.shape_cast %143 : vector<2x32xf32> to vector<2x1x32xf32>
    %145 = vector.broadcast %144 : vector<2x1x32xf32> to vector<2x16x32xf32>
    %146 = arith.addf %142, %145 : vector<2x16x32xf32>
    %147 = arith.addf %146, %141 : vector<2x16x32xf32>
    %148 = math.tanh %147 : vector<2x16x32xf32>
    %c1_60 = arith.constant 1 : index
    %c0_61 = arith.constant 0 : index
    %149 = vector.load %arg7[%c1_60, %c0_61] : memref<2x32xf32, #tpu.memory_space<vmem>>, vector<1x32xf32>
    %150 = vector.shape_cast %149 : vector<1x32xf32> to vector<32xf32>
    %151 = vector.shape_cast %150 : vector<32xf32> to vector<1x1x32xf32>
    %152 = vector.broadcast %151 : vector<1x1x32xf32> to vector<2x16x32xf32>
    %153 = arith.mulf %148, %152 : vector<2x16x32xf32>
    %cst_62 = arith.constant dense<0.000000e+00> : vector<2x16xf32>
    %154 = vector.multi_reduction <add>, %153, %cst_62 [2] : vector<2x16x32xf32> to vector<2x16xf32>
    %cst_63 = arith.constant dense<0xFF800000> : vector<2xf32>
    %155 = vector.multi_reduction <maximumf>, %154, %cst_63 [1] : vector<2x16xf32> to vector<2xf32>
    %156 = vector.shape_cast %155 : vector<2xf32> to vector<2x1xf32>
    %157 = vector.broadcast %156 : vector<2x1xf32> to vector<2x16xf32>
    %158 = arith.subf %154, %157 : vector<2x16xf32>
    %159 = math.exp %158 : vector<2x16xf32>
    %cst_64 = arith.constant dense<0.000000e+00> : vector<2xf32>
    %160 = vector.multi_reduction <add>, %159, %cst_64 [1] : vector<2x16xf32> to vector<2xf32>
    %161 = vector.shape_cast %160 : vector<2xf32> to vector<2x1xf32>
    %162 = vector.broadcast %161 : vector<2x1xf32> to vector<2x16xf32>
    %163 = arith.divf %159, %162 : vector<2x16xf32>
    %c1_65 = arith.constant 1 : index
    %c0_66 = arith.constant 0 : index
    %c0_67 = arith.constant 0 : index
    %164 = vector.load %arg10[%c1_65, %c0_66, %c0_67] : memref<2x2x16xf32, #tpu.memory_space<vmem>>, vector<1x2x16xf32>
    %165 = vector.shape_cast %164 : vector<1x2x16xf32> to vector<2x16xf32>
    %166 = vector.shape_cast %163 : vector<2x16xf32> to vector<1x2x16xf32>
    tpu.vector_store %arg10[%c1_65, %c0_66, %c0_67], %166 {strides = array<i32>} : memref<2x2x16xf32, #tpu.memory_space<vmem>>, vector<1x2x16xf32>,
    %167 = vector.shape_cast %163 : vector<2x16xf32> to vector<2x1x16xf32>
    %cst_68 = arith.constant dense<0.000000e+00> : vector<2x1x32xf32>
    %168 = tpu.matmul %167, %0, %cst_68 {dimension_numbers = #tpu.dot_dimension_numbers<[2], [1], [1], [2], [0, 0, 0, 1, 1, 2], [0], [0]>} : vector<2x1x16xf32>, vector<2x16x32xf32>, vector<2x1x32xf32> -> vector<2x1x32xf32>
    %169 = vector.shape_cast %168 : vector<2x1x32xf32> to vector<2x32xf32>
    %c1_69 = arith.constant 1 : index
    %c0_70 = arith.constant 0 : index
    %c0_71 = arith.constant 0 : index
    %170 = vector.load %arg8[%c1_69, %c0_70, %c0_71] : memref<2x32x32xf32, #tpu.memory_space<vmem>>, vector<1x32x32xf32>
    %171 = vector.shape_cast %170 : vector<1x32x32xf32> to vector<32x32xf32>
    %cst_72 = arith.constant dense<0.000000e+00> : vector<2x32xf32>
    %172 = tpu.matmul %169, %171, %cst_72 {dimension_numbers = #tpu.dot_dimension_numbers<[1], [0], [0], [1], [0, 0, 1, 1], [], []>} : vector<2x32xf32>, vector<32x32xf32>, vector<2x32xf32> -> vector<2x32xf32>
    %173 = arith.addf %93, %172 : vector<2x32xf32>
    %c0_73 = arith.constant 0 : index
    %c0_74 = arith.constant 0 : index
    %174 = vector.load %arg11[%c0_73, %c0_74] : memref<2x32xf32, #tpu.memory_space<vmem>>, vector<2x32xf32>
    tpu.vector_store %arg11[%c0_73, %c0_74], %173 {strides = array<i32>} : memref<2x32xf32, #tpu.memory_space<vmem>>, vector<2x32xf32>,
    return
  }
}

</mosaic_0001>

<bundles_post_ra>
// kernel: tpu_custom_call.1
= control target key start
LH: loop header
LB: loop body
LE: loop exit
PB: predicated region body
PF: predicated region fallthrough
CT: control target
= control target key end

     0   :  { %17 = vsyncpa [#allocation3], 0  ;;  %s2315_s0 = inlined_call_operand.hbm [shape: f32[2,16,32], index: 0, kind: input, shape index: {}]   ;;  %s2316_s1 = inlined_call_operand.vmem [shape: f32[2,32], index: 1, kind: input, shape index: {}]   ;;  %s2317_s2 = inlined_call_operand.hbm [shape: f32[2,2,20], index: 2, kind: input, shape index: {}]   ;;  %s2318_s3 = inlined_call_operand.vmem [shape: f32[32,64], index: 3, kind: input, shape index: {}]   ;;  %s2319_s4 = inlined_call_operand.hbm [shape: f32[1,64], index: 4, kind: input, shape index: {}]   ;;  %s2320_s5 = inlined_call_operand.hbm [shape: f32[32,64], index: 5, kind: input, shape index: {}]   ;;  %s2321_s6 = inlined_call_operand.vmem [shape: f32[2,5,32], index: 6, kind: input, shape index: {}]   ;;  %s2322_s7 = inlined_call_operand.vmem [shape: f32[2,32], index: 7, kind: input, shape index: {}]   ;;  %s2323_s8 = inlined_call_operand.hbm [shape: f32[2,32,32], index: 8, kind: input, shape index: {}]   ;;  %s2324_s9 = inlined_call_operand.vmem [shape: f32[1,32], index: 9, kind: input, shape index: {}]   ;;  %s2325_s10 = inlined_call_operand.hbm [shape: f32[2,2,16], index: 10, kind: output, shape index: {0}]   ;;  %s2326_s11 = inlined_call_operand.hbm [shape: f32[2,32], index: 11, kind: output, shape index: {1}]  }
   0x1   :  { %18 = vsyncpa [#allocation6], 0 }
   0x2   :  { %19 = vsyncpa [#allocation9], 0 }
   0x3   :  { %20 = vsyncpa [#allocation4], 0 }
   0x4   :  { %21 = vsyncpa [#allocation13], 0  ;;  %s1924_s17 = smov [#allocation5]   ;;  %s1760_s21 = scalar_lea.hbm %s2317_s2, 64 }
   0x5   :  { %s41_s18 = sshll.u32 %s1924_s17, 4  ;;  %p1761_p0 = scmp.ne.s32.totalorder %s2317_s2, %s1760_s21  ;;  %s42_s18 = int_to_ptr.vmem [resolvable:$true] %s41_s18 }
   0x6   :  { %p1764_p1 = scmp.lt.u32.totalorder %s1760_s21, %s2317_s2 }
   0x8   :  { %p1766_p2 = pnand %p1764_p1, %p1761_p0 }
   0xa   :  { %1769 = shalt.err (!%p1766_p2)
}
   0xb   :  { %s1770_s26 = scalar_lea.vmem %s42_s18, 64  ;;  %p1775_p4 = scmp.lt.s32.totalorder %s42_s18, %s42_s18 }
   0xc   :  { %p1771_p3 = scmp.ne.s32.totalorder %s42_s18, %s1770_s26  ;;  %p1776_p5 = scmp.lt.s32.totalorder %s1770_s26, %s1770_s26 }
   0xe   :  { %p1777_p6 = por %p1776_p5, %p1775_p4 }
  0x10   :  { %p1778_p7 = pnand %p1777_p6, %p1771_p3 }
  0x12   :  { %1781 = shalt.err (!%p1778_p7)
}
  0x13   :  { %s1925_s27 = smov 32   ;;  %s1926_s28 = smov 2  }
  0x14   :  { %47 = dma.hbm_to_vmem [thread:$0]  %s2317_s2, 64, %s42_s18, [#allocation6], %s1925_s27, %s1925_s27, %s1926_s28  }
  0x15   :  { %s1927_s12 = smov [#allocation8]   ;;  %s1928_s14 = smov [#allocation2]  }
  0x16   :  { %s65_s13 = sshll.u32 %s1927_s12, 4  ;;  %s27_s15 = sshll.u32 %s1928_s14, 4  ;;  %s66_s13 = int_to_ptr.vmem [resolvable:$true] %s65_s13  ;;  %s28_s15 = int_to_ptr.vmem [resolvable:$true] %s27_s15 }
  0x17   :  { %s1782_s19 = scalar_lea.hbm %s2320_s5, 512 }
  0x18   :  { %p1783_p8 = scmp.ne.s32.totalorder %s2320_s5, %s1782_s19  ;;  %p1786_p9 = scmp.lt.u32.totalorder %s1782_s19, %s2320_s5 }
  0x1a   :  { %p1788_p10 = pnand %p1786_p9, %p1783_p8 }
  0x1c   :  { %1791 = shalt.err (!%p1788_p10)
}
  0x1d   :  { %s1792_s2 = scalar_lea.vmem %s66_s13, 512  ;;  %p1797_p12 = scmp.lt.s32.totalorder %s66_s13, %s66_s13 }
  0x1e   :  { %p1793_p11 = scmp.ne.s32.totalorder %s66_s13, %s1792_s2  ;;  %p1798_p13 = scmp.lt.s32.totalorder %s1792_s2, %s1792_s2 }
  0x20   :  { %p1799_p0 = por %p1798_p13, %p1797_p12 }
  0x22   :  { %p1800_p1 = pnand %p1799_p0, %p1793_p11 }
  0x24   :  { %1803 = shalt.err (!%p1800_p1)
}
  0x25   :  { %s1929_s18 = smov 128   ;;  %s1930_s24 = smov 8  }
  0x26   :  { %71 = dma.hbm_to_vmem [thread:$0]  %s2320_s5, 512, %s66_s13, [#allocation9], %s1929_s18, %s1929_s18, %s1930_s24  }
  0x27   :  { %s1804_s12 = scalar_lea.hbm %s2315_s0, 512 }
  0x28   :  { %p1805_p2 = scmp.ne.s32.totalorder %s2315_s0, %s1804_s12  ;;  %p1808_p3 = scmp.lt.u32.totalorder %s1804_s12, %s2315_s0 }
  0x2a   :  { %p1810_p4 = pnand %p1808_p3, %p1805_p2 }
  0x2c   :  { %1813 = shalt.err (!%p1810_p4)
}
  0x2d   :  { %s1814_s20 = scalar_lea.vmem %s28_s15, 512  ;;  %p1819_p6 = scmp.lt.s32.totalorder %s28_s15, %s28_s15 }
  0x2e   :  { %p1815_p5 = scmp.ne.s32.totalorder %s28_s15, %s1814_s20  ;;  %p1820_p7 = scmp.lt.s32.totalorder %s1814_s20, %s1814_s20 }
  0x30   :  { %p1821_p8 = por %p1820_p7, %p1819_p6 }
  0x32   :  { %p1822_p9 = pnand %p1821_p8, %p1815_p5 }
  0x34   :  { %1825 = shalt.err (!%p1822_p9)
}
  0x35   :  { %33 = dma.hbm_to_vmem [thread:$0]  %s2315_s0, 512, %s28_s15, [#allocation3], %s1929_s18, %s1929_s18, %s1930_s24  }
  0x36   :  { %s1931_s21 = smov [#allocation7]   ;;  %s1932_s23 = smov [#allocation10]  }
  0x37   :  { %s56_s22 = sshll.u32 %s1931_s21, 4  ;;  %s81_s2 = sshll.u32 %s1932_s23, 4  ;;  %s57_s22 = int_to_ptr.vmem [resolvable:$true] %s56_s22  ;;  %s82_s2 = int_to_ptr.vmem [resolvable:$true] %s81_s2 }
  0x38   :  { %s1826_s29 = scalar_lea.hbm %s2319_s4, 16 }
  0x39   :  { %p1827_p10 = scmp.ne.s32.totalorder %s2319_s4, %s1826_s29  ;;  %p1830_p11 = scmp.lt.u32.totalorder %s1826_s29, %s2319_s4 }
  0x3b   :  { %p1832_p12 = pnand %p1830_p11, %p1827_p10 }
  0x3d   :  { %1835 = shalt.err (!%p1832_p12)
}
  0x3e   :  { %s1836_s0 = scalar_lea.vmem %s57_s22, 16  ;;  %s1840_s15 = scalar_lea.vmem %s57_s22, 32 }
  0x3f   :  { %p1837_p13 = scmp.ne.s32.totalorder %s57_s22, %s1836_s0  ;;  %p1841_p0 = scmp.lt.s32.totalorder %s57_s22, %s57_s22 }
  0x40   :  { %p1842_p1 = scmp.lt.s32.totalorder %s1840_s15, %s1836_s0 }
  0x42   :  { %p1843_p2 = por %p1842_p1, %p1841_p0 }
  0x44   :  { %p1844_p3 = pnand %p1843_p2, %p1837_p13 }
  0x46   :  { %1847 = shalt.err (!%p1844_p3)
}
  0x47   :  { %59 = dma.hbm_to_vmem [thread:$0]  %s2319_s4, 16, %s57_s22, [#allocation6]  }
  0x48   :  { %s1848_s13 = scalar_lea.hbm %s2323_s8, 1024 }
  0x49   :  { %p1849_p4 = scmp.ne.s32.totalorder %s2323_s8, %s1848_s13  ;;  %p1852_p5 = scmp.lt.u32.totalorder %s1848_s13, %s2323_s8 }
  0x4b   :  { %p1854_p6 = pnand %p1852_p5, %p1849_p4 }
  0x4d   :  { %1857 = shalt.err (!%p1854_p6)
}
  0x4e   :  { %s1858_s29 = scalar_lea.vmem %s82_s2, 1024  ;;  %p1863_p8 = scmp.lt.s32.totalorder %s82_s2, %s82_s2 }
  0x4f   :  { %p1859_p7 = scmp.ne.s32.totalorder %s82_s2, %s1858_s29  ;;  %p1864_p9 = scmp.lt.s32.totalorder %s1858_s29, %s1858_s29 }
  0x51   :  { %p1865_p10 = por %p1864_p9, %p1863_p8 }
  0x53   :  { %p1866_p11 = pnand %p1865_p10, %p1859_p7 }
  0x55   :  { %1869 = shalt.err (!%p1866_p11)
}
  0x56   :  { %87 = dma.hbm_to_vmem [thread:$0]  %s2323_s8, 1024, %s82_s2, [#allocation9], %s1929_s18, %s1929_s18, %s1930_s24  }
  0x57   :  { %1914 = dma.done.wait [#allocation3], 512  }
  0x58   :  { %1915 = vsyncadd [#allocation3], 4294966784 }
  0x59   :  { %1916 = dma.done.wait [#allocation6], 80  }
  0x5a   :  { %1917 = vsyncadd [#allocation6], 4294967216 }
  0x5b   :  { %1918 = dma.done.wait [#allocation9], 1536  }
  0x5c   :  { %1919 = vsyncadd [#allocation9], 4294965760  ;;  %v304_v0 = vlaneseq  ;;  %v1933_v1 = vmov 0.0|0.0   ;;  %vm1934_vm0 = vmmov 0   ;;  %v1935_v2 = vmov 0.0   ;;  %v219_v7 = vld [vmem:[#allocation8] sm:$0xff] }
  0x5d   :  { %1668 = vmatprep.subr.bf16.mxu1 %v1933_v1  ;;  %1607 = vmatprep.mubr.msk.f32.mxu1 %vm1934_vm0, %v1935_v2  ;;  %v897_v6 = vld [vmem:[#allocation5 + $0x2] sm:$0x3]  ;;  %v220_v8 = vld [vmem:[#allocation8 + $0x8] sm:$0xff]  ;;  %v221_v14 = vld [vmem:[#allocation8 + $0x10] sm:$0xff]  ;;  %vm120_vm1 = vcmask 261120   ;;  %s1937_s4 = smov 96  }
  0x5e   :  { %v2077_v3 = vshrl.u32 %v304_v0, 7  ;;  %v1669_v11 = vpack.c.bf16 %v220_v8, %v219_v7  ;;  %v109_v12 = vld [vmem:[%s2318_s3] sm:$0xff]  ;;  %v110_v13 = vld [vmem:[%s2318_s3 + $0x8] sm:$0xff]  ;;  %v111_v17 = vld [vmem:[%s2318_s3 + $0x10] sm:$0xff]  ;;  %vm536_vm2 = vcmask 130112   ;;  %vm547_vm3 = vcmask 1041409  }
  0x5f   :  { %v1660_v15 = vpack.c.bf16 %v110_v13, %v109_v12  ;;  %v222_v16 = vld [vmem:[#allocation8 + $0x18] sm:$0xff]  ;;  %v107_v22 = vld [vmem:[#allocation2 + $0x10] sm:$0xff]  ;;  %v106_v25 = vld [vmem:[#allocation2 + $0x8] sm:$0xff]  ;;  %vm550_vm4 = vcmask 123904   ;;  %vm670_vm5 = vcmask 130048  }
  0x60   :  { %v2080_v4 = vsub.s32 1, %v2077_v3  ;;  %v2083_v5 = vsub.s32 0, %v2077_v3  ;;  %v112_v18 = vld [vmem:[%s2318_s3 + $0x18] sm:$0xff]  ;;  %v105_v20 = vld [vmem:[#allocation2] sm:$0xff]  ;;  %1670 = vmatpush3.bf16.msra.mxu1 %v1669_v11  ;;  %v1672_v21 = vpack.c.bf16 %v222_v16, %v221_v14  ;;  %v1539_v40 = vld [vmem:[%s2321_s6 + $0x9] ss:$0 sm:$0xff] }
  0x61   :  { %v1664_v19 = vpack.c.bf16 %v112_v18, %v111_v17  ;;  %1661 = vmatprep.subr.bf16.mxu0 %v1660_v15  ;;  %1671 = vmatprep.subr.bf16.mxu1 %v1933_v1  ;;  %v108_v23 = vld [vmem:[#allocation2 + $0x18] sm:$0xff]  ;;  %v218_v24 = vld [vmem:[%s2316_s1] sm:$0x3]  ;;  %v2107_v27 = vpack.c.bf16 %v106_v25, %v105_v20  ;;  %v1541_v41 = vld [vmem:[%s2321_s6 + $0xa] ss:$0 sm:$0xff] }
  0x62   :  { %v912_v9 = vrot.slane %v897_v6, %v2080_v4  ;;  %v901_v10 = vrot.slane %v897_v6, %v2083_v5  ;;  %1663 = vmatpush3.bf16.msra.mxu0 %v1660_v15  ;;  %1593 = vmatprep.mubr.msk.f32.mxu0 %vm120_vm1, %v105_v20  ;;  %v2104_v26 = vpack.c.bf16 %v108_v23, %v107_v22  ;;  %v1537_v42 = vld [vmem:[%s2321_s6 + $0x8] ss:$0 sm:$0xff]  ;;  %v1543_v47 = vld [vmem:[%s2321_s6 + $0xb] ss:$0 sm:$0xff]  ;;  %v1545_v6 = vld [vmem:[%s2321_s6 + $0xc] ss:$0 sm:$0xff] }
  0x63   :  { %1665 = vmatprep.subr.bf16.mxu0 %v1664_v19 }
  0x64   :  { %914 = vbcast.lane.b32.xlu1 %v912_v9, 256  ;;  %903 = vbcast.lane.b32.xlu0 %v901_v10, 256 }
  0x65   :  { %1673 = vmatpush3.bf16.msra.mxu1 %v1672_v21 }
  0x66   :  { %1667 = vmatpush3.bf16.msra.mxu0 %v1664_v19  ;;  %1674 = vmatprep.subr.bf16.mxu1 %v1933_v1 }
  0x67   :  { %1677 = vmatprep.subr.bf16.mxu0 %v1933_v1 }
  0x68   :  { %918 = vbcast.lane.b32.xlu1 %v912_v9, 264  ;;  %907 = vbcast.lane.b32.xlu0 %v901_v10, 264 }
  0x69   :  { %1608 = vmatmul.mubr.msk.f32.vlgmr.msra.gmra.mrb[0].mxu1 %vm120_vm1, %v218_v24  ;;  %1594 = vmatmul.mubr.msk.f32.vlgmr.msra.gmra.mrb[0].mxu0 %vm120_vm1, %v106_v25 }
  0x6a   :  { %1596 = vmatprep.mubr.msk.f32.mxu0 %vm120_vm1, %v107_v22  ;;  %1679 = vmatpush3.bf16.msra.mxu0 %v2104_v26 }
  0x6b   :  { %1676 = vmatpush3.bf16.msra.mxu1 %v2107_v27  ;;  %1614 = vmatprep.mubr.msk.f32.mxu1 %vm1934_vm0, %v1935_v2 }
  0x6c   :  { %940 = vbcast.lane.b32.xlu1 %v901_v10, 265  ;;  %936 = vbcast.lane.b32.xlu0 %v901_v10, 257 }
  0x6d   :  { %1597 = vmatmul.mubr.msk.f32.gmra.mrb[2].mxu0 %vm120_vm1, %v108_v23  ;;  %1686 = vmatprep.subr.bf16.mxu0 %v1933_v1 }
  0x6e   :  { %1621 = vmatprep.mubr.msk.f32.mxu0 %vm1934_vm0, %v1935_v2  ;;  %1680 = vmatprep.subr.bf16.mxu1 %v1933_v1 }
  0x70   :  { %948 = vbcast.lane.b32.xlu1 %v912_v9, 265  ;;  %944 = vbcast.lane.b32.xlu0 %v912_v9, 257 }
  0x74   :  { %969 = vbcast.lane.b32.xlu1 %v901_v10, 266  ;;  %965 = vbcast.lane.b32.xlu0 %v901_v10, 258 }
  0x78   :  { %977 = vbcast.lane.b32.xlu1 %v912_v9, 266  ;;  %973 = vbcast.lane.b32.xlu0 %v912_v9, 258 }
  0x7c   :  { %998 = vbcast.lane.b32.xlu1 %v901_v10, 267  ;;  %994 = vbcast.lane.b32.xlu0 %v901_v10, 259 }
  0x80   :  { %1006 = vbcast.lane.b32.xlu1 %v912_v9, 267  ;;  %1002 = vbcast.lane.b32.xlu0 %v912_v9, 259 }
  0x84   :  { %1027 = vbcast.lane.b32.xlu1 %v901_v10, 268  ;;  %1023 = vbcast.lane.b32.xlu0 %v901_v10, 260 }
  0x88   :  { %1035 = vbcast.lane.b32.xlu1 %v912_v9, 268  ;;  %1031 = vbcast.lane.b32.xlu0 %v912_v9, 260 }
  0xd6   :  { %v915_v28 = vpop.permute.xlu1 %914  ;;  %v904_v29 = vpop.permute.xlu0 %903 }
  0xd7   :  { %v926_v50 = vmul.f32 %v1537_v42, %v904_v29  ;;  %v928_v60 = vmul.f32 %v1537_v42, %v915_v28 }
  0xda   :  { %v919_v30 = vpop.permute.xlu1 %918  ;;  %v908_v31 = vpop.permute.xlu0 %907 }
  0xdb   :  { %v927_v48 = vmul.f32 %v1537_v42, %v908_v31  ;;  %v929_v61 = vmul.f32 %v1537_v42, %v919_v30  ;;  %v303_v31 = vld [vmem:[#allocation5] sm:$0x3] }
  0xde   :  { %v941_v32 = vpop.permute.xlu1 %940  ;;  %v937_v33 = vpop.permute.xlu0 %936 }
  0xdf   :  { %v956_v43 = vmul.f32 %v1539_v40, %v941_v32  ;;  %v955_v46 = vmul.f32 %v1539_v40, %v937_v33 }
  0xe1   :  { %v960_v52 = vadd.f32 %v956_v43, %v927_v48  ;;  %v959_v58 = vadd.f32 %v955_v46, %v926_v50  ;;  %v1520_v43 = vld [vmem:[#allocation7] ss:$0 sm:$0xff] }
  0xe2   :  { %v949_v34 = vpop.permute.xlu1 %948  ;;  %v945_v35 = vpop.permute.xlu0 %944 }
  0xe3   :  { %v958_v53 = vmul.f32 %v1539_v40, %v949_v34  ;;  %v957_v54 = vmul.f32 %v1539_v40, %v945_v35  ;;  %v307_v34 = vrot.slane %v303_v31, %v2083_v5  ;;  %v1546_v35 = vld [vmem:[%s2322_s7 + $0x1] ss:$0 sm:$0xff] }
  0xe5   :  { %v962_v9 = vadd.f32 %v958_v53, %v929_v61  ;;  %v961_v10 = vadd.f32 %v957_v54, %v928_v60 }
  0xe6   :  { %v970_v36 = vpop.permute.xlu1 %969  ;;  %v966_v37 = vpop.permute.xlu0 %965 }
  0xe7   :  { %v985_v49 = vmul.f32 %v1541_v41, %v970_v36  ;;  %v984_v51 = vmul.f32 %v1541_v41, %v966_v37  ;;  %v318_v36 = vrot.slane %v303_v31, %v2080_v4  ;;  %v1936_v37 = vmov 1966171168   ;;  %v1528_v31 = vld [vmem:[%s2321_s6 + $0x1] ss:$0 sm:$0xff] }
  0xe9   :  { %v989_v62 = vadd.f32 %v985_v49, %v960_v52  ;;  %v988_v7 = vadd.f32 %v984_v51, %v959_v58 }
  0xea   :  { %v978_v38 = vpop.permute.xlu1 %977  ;;  %v974_v39 = vpop.permute.xlu0 %973 }
  0xeb   :  { %v987_v63 = vmul.f32 %v1541_v41, %v978_v38  ;;  %v986_v8 = vmul.f32 %v1541_v41, %v974_v39  ;;  %v457_v38 = vunpack.c.l.s4 %v1936_v37 }
  0xed   :  { %v991_v19 = vadd.f32 %v987_v63, %v962_v9  ;;  %v990_v20 = vadd.f32 %v986_v8, %v961_v10  ;;  %v458_v39 = vunpack.c.0.s8 %v457_v38 }
  0xee   :  { %v999_v44 = vpop.permute.xlu1 %998  ;;  %v995_v45 = vpop.permute.xlu0 %994 }
  0xef   :  { %v1014_v55 = vmul.f32 %v1543_v47, %v999_v44  ;;  %v1013_v59 = vmul.f32 %v1543_v47, %v995_v45  ;;  %v461_v40 = vsub.s32 %v458_v39, %v2077_v3 }
  0xf1   :  { %v1018_v11 = vadd.f32 %v1014_v55, %v989_v62  ;;  %v1017_v15 = vadd.f32 %v1013_v59, %v988_v7 }
  0xf2   :  { %v1007_v56 = vpop.permute.xlu1 %1006  ;;  %v1003_v57 = vpop.permute.xlu0 %1002 }
  0xf3   :  { %v1016_v12 = vmul.f32 %v1543_v47, %v1007_v56  ;;  %v1015_v16 = vmul.f32 %v1543_v47, %v1003_v57 }
  0xf5   :  { %v1020_v23 = vadd.f32 %v1016_v12, %v991_v19  ;;  %v1019_v28 = vadd.f32 %v1015_v16, %v990_v20 }
  0xf6   :  { %v1028_v13 = vpop.permute.xlu1 %1027  ;;  %v1024_v14 = vpop.permute.xlu0 %1023 }
  0xf7   :  { %v1043_v17 = vmul.f32 %v1545_v6, %v1028_v13  ;;  %v1042_v18 = vmul.f32 %v1545_v6, %v1024_v14 }
  0xf9   :  { %v1047_v21 = vadd.f32 %v1043_v17, %v1018_v11  ;;  %v1046_v22 = vadd.f32 %v1042_v18, %v1017_v15 }
  0xfa   :  { %v1036_v24 = vpop.permute.xlu1 %1035  ;;  %v1032_v25 = vpop.permute.xlu0 %1031 }
  0xfb   :  { %v1045_v29 = vmul.f32 %v1545_v6, %v1036_v24  ;;  %v1044_v30 = vmul.f32 %v1545_v6, %v1032_v25  ;;  %1056 = vrot.lane.b32.xlu1 %v1047_v21, %s1925_s27  ;;  %1054 = vrot.lane.b32.xlu0 %v1046_v22, %s1925_s27 }
  0xfd   :  { %v1049_v32 = vadd.f32 %v1045_v29, %v1020_v23  ;;  %v1048_v33 = vadd.f32 %v1044_v30, %v1019_v28  ;;  %v1527_v30 = vld [vmem:[%s2321_s6] ss:$0 sm:$0xff] }
  0xff   :  { %1060 = vrot.lane.b32.xlu1 %v1049_v32, %s1925_s27  ;;  %1058 = vrot.lane.b32.xlu0 %v1048_v33, %s1925_s27 }
 0x103   :  { %1080 = vrot.lane.b32.xlu0 %v1546_v35, %s1925_s27  ;;  %309 = vbcast.lane.b32.xlu1 %v307_v34, 256 }
 0x107   :  { %313 = vbcast.lane.b32.xlu0 %v307_v34, 264  ;;  %320 = vbcast.lane.b32.xlu1 %v318_v36, 256 }
 0x10b   :  { %324 = vbcast.lane.b32.xlu0 %v318_v36, 264  ;;  %341 = vbcast.lane.b32.xlu1 %v307_v34, 257 }
 0x10f   :  { %345 = vbcast.lane.b32.xlu0 %v307_v34, 265  ;;  %349 = vbcast.lane.b32.xlu1 %v318_v36, 257 }
 0x113   :  { %353 = vbcast.lane.b32.xlu0 %v318_v36, 265  ;;  %370 = vbcast.lane.b32.xlu1 %v307_v34, 258 }
 0x117   :  { %374 = vbcast.lane.b32.xlu0 %v307_v34, 266  ;;  %378 = vbcast.lane.b32.xlu1 %v318_v36, 258 }
 0x11b   :  { %382 = vbcast.lane.b32.xlu0 %v318_v36, 266  ;;  %399 = vbcast.lane.b32.xlu1 %v307_v34, 259 }
 0x11f   :  { %403 = vbcast.lane.b32.xlu0 %v307_v34, 267  ;;  %407 = vbcast.lane.b32.xlu1 %v318_v36, 259 }
 0x123   :  { %411 = vbcast.lane.b32.xlu0 %v318_v36, 267  ;;  %428 = vbcast.lane.b32.xlu1 %v307_v34, 260 }
 0x127   :  { %432 = vbcast.lane.b32.xlu0 %v307_v34, 268  ;;  %436 = vbcast.lane.b32.xlu1 %v318_v36, 260 }
 0x12b   :  { %440 = vbcast.lane.b32.xlu0 %v318_v36, 268  ;;  %v1529_v36 = vld [vmem:[%s2321_s6 + $0x2] ss:$0 sm:$0xff] }
 0x13c   :  { %v292_v41 = vpop.f32.mrb[0].mxu1  ;;  %v1595_v42 = vpop.f32.mrb[0].mxu0 }
 0x13d   :  { %v462_v44 = vrot.slane %v292_v41, %v461_v40  ;;  %v1609_v45 = vpop.f32.mrb[1].mxu1  ;;  %v199_v46 = vpop.f32.mrb[1].mxu0  ;;  %v205_v49 = vadd.f32 %v1595_v42, %v1520_v43 }
 0x13e   :  { %v200_v50 = vadd.f32 %v1520_v43, %v199_v46  ;;  %v1530_v46 = vld [vmem:[%s2321_s6 + $0x3] ss:$0 sm:$0xff] }
 0x13f   :  { %v463_v47 = vcombine.high %v462_v44, %v462_v44  ;;  %v470_v48 = vrot.slane %v462_v44, %v461_v40 }
 0x140   :  { %v1598_v51 = vpop.f32.mrb[2].mxu0 }
 0x141   :  { %v477_v52 = vrot.slane %v463_v47, %v461_v40  ;;  %v215_v53 = vadd.f32 %v1598_v51, %v1520_v43  ;;  %v209_v54 = vpop.f32.mrb[3].mxu0  ;;  %v481_v55 = vrot.slane %v470_v48, %v2083_v5 }
 0x142   :  { %v210_v56 = vadd.f32 %v1520_v43, %v209_v54 }
 0x143   :  { %v2149_v57 = vadd.f32 %v481_v55, %v205_v49  ;;  %v2151_v58 = vadd.f32 %v481_v55, %v200_v50  ;;  %v485_v59 = vrot.slane %v477_v52, %v2083_v5 }
 0x145   :  { %v2154_v60 = vadd.f32 %v485_v59, %v215_v53  ;;  %v2156_v61 = vadd.f32 %v485_v59, %v210_v56 }
 0x16d   :  { %v1057_v62 = vpop.permute.xlu1 %1056  ;;  %v1055_v63 = vpop.permute.xlu0 %1054 }
 0x16e   :  { %v1067_v6 = vadd.f32 %v1057_v62, %v2149_v57  ;;  %v1066_v7 = vadd.f32 %v1055_v63, %v2151_v58 }
 0x170   :  { %1720 = vtanh.f32 %v1067_v6 }
 0x171   :  { %1722 = vtanh.f32 %v1066_v7  ;;  %v1061_v8 = vpop.permute.xlu1 %1060  ;;  %v1059_v9 = vpop.permute.xlu0 %1058  ;;  %v1531_v7 = vld [vmem:[%s2321_s6 + $0x4] ss:$0 sm:$0xff] }
 0x172   :  { %v1069_v10 = vadd.f32 %v1061_v8, %v2154_v60  ;;  %v1068_v11 = vadd.f32 %v1059_v9, %v2156_v61 }
 0x174   :  { %1724 = vtanh.f32 %v1069_v10 }
 0x175   :  { %1726 = vtanh.f32 %v1068_v11  ;;  %v1081_v12 = vpop.permute.xlu0 %1080  ;;  %v310_v13 = vpop.permute.xlu1 %309 }
 0x176   :  { %v331_v34 = vmul.f32 %v1527_v30, %v310_v13 }
 0x179   :  { %v314_v14 = vpop.permute.xlu0 %313  ;;  %v321_v15 = vpop.permute.xlu1 %320 }
 0x17a   :  { %v1721_v16 = vpop.eup %1720  ;;  %v332_v39 = vmul.f32 %v1527_v30, %v314_v14  ;;  %v333_v41 = vmul.f32 %v1527_v30, %v321_v15 }
 0x17b   :  { %v1723_v17 = vpop.eup %1722  ;;  %v1084_v18 = vmul.f32 %v1721_v16, %v1081_v12 }
 0x17c   :  { %v1083_v19 = vmul.f32 %v1723_v17, %v1081_v12 }
 0x17d   :  { %v325_v20 = vpop.permute.xlu0 %324  ;;  %v342_v21 = vpop.permute.xlu1 %341  ;;  %1093 = vrot.lane.b32.xlu0 %v1084_v18, %s1937_s4 }
 0x17e   :  { %v1725_v22 = vpop.eup %1724  ;;  %1091 = vrot.lane.b32.xlu1 %v1083_v19, %s1937_s4  ;;  %v360_v35 = vmul.f32 %v1528_v31, %v342_v21  ;;  %v334_v48 = vmul.f32 %v1527_v30, %v325_v20 }
 0x17f   :  { %v1727_v23 = vpop.eup %1726  ;;  %v1086_v24 = vmul.f32 %v1725_v22, %v1081_v12 }
 0x180   :  { %v1085_v25 = vmul.f32 %v1727_v23, %v1081_v12  ;;  %v364_v42 = vadd.f32 %v360_v35, %v331_v34 }
 0x181   :  { %v346_v28 = vpop.permute.xlu0 %345  ;;  %v350_v29 = vpop.permute.xlu1 %349  ;;  %1097 = vrot.lane.b32.xlu0 %v1086_v24, %s1937_s4 }
 0x182   :  { %1095 = vrot.lane.b32.xlu1 %v1085_v25, %s1937_s4  ;;  %v361_v40 = vmul.f32 %v1528_v31, %v346_v28  ;;  %v362_v43 = vmul.f32 %v1528_v31, %v350_v29 }
 0x184   :  { %v365_v49 = vadd.f32 %v361_v40, %v332_v39  ;;  %v366_v52 = vadd.f32 %v362_v43, %v333_v41 }
 0x185   :  { %v354_v32 = vpop.permute.xlu0 %353  ;;  %v371_v33 = vpop.permute.xlu1 %370 }
 0x186   :  { %v389_v44 = vmul.f32 %v1529_v36, %v371_v33  ;;  %v363_v50 = vmul.f32 %v1528_v31, %v354_v32 }
 0x188   :  { %v393_v53 = vadd.f32 %v389_v44, %v364_v42  ;;  %v367_v62 = vadd.f32 %v363_v50, %v334_v48 }
 0x189   :  { %v375_v37 = vpop.permute.xlu0 %374  ;;  %v379_v38 = vpop.permute.xlu1 %378 }
 0x18a   :  { %v390_v51 = vmul.f32 %v1529_v36, %v375_v37  ;;  %v391_v54 = vmul.f32 %v1529_v36, %v379_v38 }
 0x18c   :  { %v394_v63 = vadd.f32 %v390_v51, %v365_v49  ;;  %v395_v8 = vadd.f32 %v391_v54, %v366_v52 }
 0x18d   :  { %v383_v45 = vpop.permute.xlu0 %382  ;;  %v400_v47 = vpop.permute.xlu1 %399 }
 0x18e   :  { %v418_v55 = vmul.f32 %v1530_v46, %v400_v47  ;;  %v392_v6 = vmul.f32 %v1529_v36, %v383_v45 }
 0x190   :  { %v422_v9 = vadd.f32 %v418_v55, %v393_v53  ;;  %v396_v15 = vadd.f32 %v392_v6, %v367_v62  ;;  %v526_v53 = vand.u32 127, %v304_v0 }
 0x191   :  { %v404_v56 = vpop.permute.xlu0 %403  ;;  %v408_v59 = vpop.permute.xlu1 %407 }
 0x192   :  { %v419_v10 = vmul.f32 %v1530_v46, %v404_v56  ;;  %v420_v11 = vmul.f32 %v1530_v46, %v408_v59  ;;  %v531_v54 = vadd.s32 4294967288, %v526_v53  ;;  %v2197_v62 = vsub.s32 %v526_v53, %v2077_v3 }
 0x194   :  { %v423_v16 = vadd.f32 %v419_v10, %v394_v63  ;;  %v424_v17 = vadd.f32 %v420_v11, %v395_v8  ;;  %v2194_v55 = vsub.s32 %v531_v54, %v2077_v3 }
 0x195   :  { %v412_v12 = vpop.permute.xlu0 %411  ;;  %v429_v13 = vpop.permute.xlu1 %428 }
 0x196   :  { %v447_v14 = vmul.f32 %v1531_v7, %v429_v13  ;;  %v421_v18 = vmul.f32 %v1530_v46, %v412_v12  ;;  %v1938_v13 = vmov 0  }
 0x197   :  { %1719 = vset.pattern.permute.xlu1 %v1938_v13  ;;  %1718 = vset.pattern.permute.xlu0 %v1938_v13 }
 0x198   :  { %v451_v19 = vadd.f32 %v447_v14, %v422_v9  ;;  %v425_v25 = vadd.f32 %v421_v18, %v396_v15 }
 0x199   :  { %v433_v20 = vpop.permute.xlu0 %432  ;;  %v437_v21 = vpop.permute.xlu1 %436 }
 0x19a   :  { %v492_v22 = vadd.f32 %v2151_v58, %v451_v19  ;;  %v448_v23 = vmul.f32 %v1531_v7, %v433_v20  ;;  %v449_v24 = vmul.f32 %v1531_v7, %v437_v21  ;;  %v1532_v58 = vld [vmem:[%s2322_s7] ss:$0 sm:$0xff]  ;;  %s1939_s7 = smov [#allocation11]  }
 0x19b   :  { %s1492_s1 = sshll.u32 %s1939_s7, 4  ;;  %s1493_s1 = int_to_ptr.vmem [resolvable:$true] %s1492_s1 }
 0x19c   :  { %1728 = vtanh.f32 %v492_v22  ;;  %v452_v28 = vadd.f32 %v448_v23, %v423_v16  ;;  %v453_v29 = vadd.f32 %v449_v24, %v424_v17  ;;  %s1870_s15 = scalar_lea.vmem %s1493_s1, 64  ;;  %p1875_p13 = scmp.lt.s32.totalorder %s1493_s1, %s1493_s1 }
 0x19d   :  { %v441_v30 = vpop.permute.xlu0 %440  ;;  %p1871_p12 = scmp.ne.s32.totalorder %s1493_s1, %s1870_s15  ;;  %p1876_p0 = scmp.lt.s32.totalorder %s1870_s15, %s1870_s15 }
 0x19e   :  { %v493_v31 = vadd.f32 %v2149_v57, %v452_v28  ;;  %v494_v32 = vadd.f32 %v2156_v61, %v453_v29  ;;  %v450_v33 = vmul.f32 %v1531_v7, %v441_v30 }
 0x19f   :  { %p1877_p1 = por %p1876_p0, %p1875_p13 }
 0x1a0   :  { %1730 = vtanh.f32 %v493_v31  ;;  %v454_v34 = vadd.f32 %v450_v33, %v425_v25 }
 0x1a1   :  { %1732 = vtanh.f32 %v494_v32  ;;  %p1878_p2 = pnand %p1877_p1, %p1871_p12 }
 0x1a2   :  { %v495_v35 = vadd.f32 %v2154_v60, %v454_v34 }
 0x1a4   :  { %1734 = vtanh.f32 %v495_v35 }
 0x1a6   :  { %v1729_v36 = vpop.eup %1728 }
 0x1a7   :  { %v505_v37 = vmul.f32 %v1729_v36, %v1532_v58 }
 0x1a9   :  { %v509_v38 = vsel %vm120_vm1, %v505_v37, 0.0 }
 0x1aa   :  { %v1731_v39 = vpop.eup %1730  ;;  %510 = vadd.xlane.f32.xlu1 %v509_v38 }
 0x1ab   :  { %v1733_v57 = vpop.eup %1732  ;;  %v506_v40 = vmul.f32 %v1731_v39, %v1532_v58 }
 0x1ac   :  { %v507_v41 = vmul.f32 %v1733_v57, %v1532_v58 }
 0x1ad   :  { %v512_v61 = vsel %vm120_vm1, %v506_v40, 0.0 }
 0x1ae   :  { %v1735_v42 = vpop.eup %1734  ;;  %513 = vadd.xlane.f32.xlu0 %v512_v61  ;;  %v515_v60 = vsel %vm120_vm1, %v507_v41, 0.0 }
 0x1af   :  { %v508_v43 = vmul.f32 %v1735_v42, %v1532_v58 }
 0x1b1   :  { %v518_v44 = vsel %vm120_vm1, %v508_v43, 0.0 }
 0x1b2   :  { %516 = vadd.xlane.f32.xlu0 %v515_v60  ;;  %519 = vadd.xlane.f32.xlu1 %v518_v44 }
 0x1ef   :  { %v1094_v45 = vpop.permute.xlu0 %1093 }
 0x1f0   :  { %v1092_v46 = vpop.permute.xlu1 %1091  ;;  %v1106_v47 = vsel %vm120_vm1, %v1094_v45, 0.0 }
 0x1f1   :  { %v1103_v48 = vsel %vm120_vm1, %v1092_v46, 0.0  ;;  %1107 = vadd.xlane.f32.xlu1 %v1106_v47 }
 0x1f2   :  { %1104 = vadd.xlane.f32.xlu0 %v1103_v48 }
 0x1f3   :  { %v1098_v49 = vpop.permute.xlu0 %1097 }
 0x1f4   :  { %v1096_v50 = vpop.permute.xlu1 %1095  ;;  %v1112_v51 = vsel %vm120_vm1, %v1098_v49, 0.0 }
 0x1f5   :  { %v1109_v52 = vsel %vm120_vm1, %v1096_v50, 0.0  ;;  %1113 = vadd.xlane.f32.xlu1 %v1112_v51 }
 0x1f6   :  { %1110 = vadd.xlane.f32.xlu0 %v1109_v52 }
 0x237   :  { %v511_v56 = vpop.xlane.xlu1 %510 }
 0x238   :  { %v530_v8 = vrot.slane %v511_v56, %v2197_v62 }
 0x23b   :  { %v514_v59 = vpop.xlane.xlu0 %513 }
 0x23c   :  { %v535_v63 = vrot.slane %v514_v59, %v2194_v55 }
 0x23e   :  { %v537_v10 = vsel %vm536_vm2, %v535_v63, %v530_v8 }
 0x23f   :  { %v517_v6 = vpop.xlane.xlu0 %516  ;;  %v520_v7 = vpop.xlane.xlu1 %519 }
 0x240   :  { %v541_v9 = vrot.slane %v517_v6, %v2197_v62  ;;  %v545_v0 = vrot.slane %v520_v7, %v2194_v55 }
 0x242   :  { %v546_v11 = vsel %vm536_vm2, %v545_v0, %v541_v9 }
 0x243   :  { %v548_v3 = vsel %vm547_vm3, %v546_v11, %v537_v10 }
 0x244   :  { %v551_v12 = vsel %vm550_vm4, %v548_v3, -inf }
 0x245   :  { %552 = vmax.xlane.f32.xlu0 %v551_v12 }
 0x27e   :  { %v1108_v14 = vpop.xlane.xlu1 %1107 }
 0x27f   :  { %v1105_v15 = vpop.xlane.xlu0 %1104  ;;  %v1126_v17 = vrot.slane %v1108_v14, %v2194_v55 }
 0x280   :  { %v1122_v16 = vrot.slane %v1105_v15, %v2197_v62 }
 0x282   :  { %v1114_v18 = vpop.xlane.xlu1 %1113  ;;  %v1127_v22 = vsel %vm536_vm2, %v1126_v17, %v1122_v16 }
 0x283   :  { %v1111_v19 = vpop.xlane.xlu0 %1110  ;;  %v1135_v20 = vrot.slane %v1114_v18, %v2194_v55 }
 0x284   :  { %v1131_v21 = vrot.slane %v1111_v19, %v2197_v62 }
 0x286   :  { %v1136_v23 = vsel %vm536_vm2, %v1135_v20, %v1131_v21 }
 0x287   :  { %v1137_v24 = vsel %vm547_vm3, %v1136_v23, %v1127_v22 }
 0x288   :  { %v1139_v25 = vsel %vm550_vm4, %v1137_v24, -inf }
 0x289   :  { %1140 = vmax.xlane.f32.xlu1 %v1139_v25 }
 0x2d2   :  { %v553_v28 = vpop.xlane.xlu0 %552 }
 0x2d3   :  { %v558_v29 = vrot.slane %v553_v28, %v2083_v5  ;;  %v562_v30 = vrot.slane %v553_v28, %v2080_v4 }
 0x2d5   :  { %v565_v31 = vsub.f32 %v511_v56, %v558_v29  ;;  %v566_v32 = vsub.f32 %v514_v59, %v558_v29  ;;  %v567_v33 = vsub.f32 %v517_v6, %v562_v30  ;;  %v568_v58 = vsub.f32 %v520_v7, %v562_v30 }
 0x2d7   :  { %v569_v34 = vmul.f32 1.442695, %v565_v31  ;;  %v571_v35 = vmul.f32 1.442695, %v566_v32  ;;  %v573_v36 = vmul.f32 1.442695, %v567_v33 }
 0x2d8   :  { %v575_v37 = vmul.f32 1.442695, %v568_v58 }
 0x2d9   :  { %1736 = vpow2.f32 %v569_v34 }
 0x2da   :  { %1738 = vpow2.f32 %v571_v35 }
 0x2db   :  { %1740 = vpow2.f32 %v573_v36 }
 0x2dc   :  { %1742 = vpow2.f32 %v575_v37 }
 0x2e3   :  { %v2217_v38 = vpop.eup %1736 }
 0x2e4   :  { %v2219_v39 = vpop.eup %1738  ;;  %582 = vperm.xlu0 %1718, %v2217_v38  }
 0x2e5   :  { %585 = vperm.xlu1 %1719, %v2219_v39   ;;  %v1741_v57 = vpop.eup %1740 }
 0x2e6   :  { %v1743_v40 = vpop.eup %1742 }
 0x2e9   :  { %588 = vperm.xlu1 %1719, %v1741_v57  }
 0x2ed   :  { %591 = vperm.xlu1 %1719, %v1743_v40  }
 0x316   :  { %v1141_v61 = vpop.xlane.xlu1 %1140 }
 0x317   :  { %v1146_v41 = vrot.slane %v1141_v61, %v2083_v5  ;;  %v1150_v42 = vrot.slane %v1141_v61, %v2080_v4 }
 0x319   :  { %v1153_v43 = vsub.f32 %v1105_v15, %v1146_v41  ;;  %v1154_v60 = vsub.f32 %v1108_v14, %v1146_v41  ;;  %v1155_v45 = vsub.f32 %v1111_v19, %v1150_v42  ;;  %v1156_v47 = vsub.f32 %v1114_v18, %v1150_v42 }
 0x31b   :  { %v1157_v44 = vmul.f32 1.442695, %v1153_v43  ;;  %v1159_v46 = vmul.f32 1.442695, %v1154_v60  ;;  %v1161_v48 = vmul.f32 1.442695, %v1155_v45 }
 0x31c   :  { %v1163_v49 = vmul.f32 1.442695, %v1156_v47  ;;  %v816_v60 = vld [vmem:[#allocation10 + $0x8] sm:$0xff] }
 0x31d   :  { %1744 = vpow2.f32 %v1157_v44 }
 0x31e   :  { %1746 = vpow2.f32 %v1159_v46 }
 0x31f   :  { %1748 = vpow2.f32 %v1161_v48 }
 0x320   :  { %1750 = vpow2.f32 %v1163_v49 }
 0x327   :  { %v1745_v50 = vpop.eup %1744 }
 0x328   :  { %1170 = vperm.xlu1 %1719, %v1745_v50   ;;  %v1747_v51 = vpop.eup %1746 }
 0x329   :  { %v1749_v52 = vpop.eup %1748 }
 0x32a   :  { %v1751_v53 = vpop.eup %1750 }
 0x32c   :  { %1173 = vperm.xlu1 %1719, %v1747_v51  }
 0x330   :  { %1176 = vperm.xlu1 %1719, %v1749_v52  }
 0x334   :  { %1179 = vperm.xlu1 %1719, %v1751_v53  }
 0x363   :  { %v583_v56 = vpop.permute.xlu0 %582 }
 0x364   :  { %v586_v54 = vpop.permute.xlu1 %585  ;;  %v596_v63 = vrot.slane %v583_v56, %v2197_v62 }
 0x365   :  { %v600_v6 = vrot.slane %v586_v54, %v2194_v55 }
 0x367   :  { %v601_v0 = vsel %vm536_vm2, %v600_v6, %v596_v63 }
 0x368   :  { %v589_v59 = vpop.permute.xlu1 %588 }
 0x369   :  { %v605_v8 = vrot.slane %v589_v59, %v2197_v62 }
 0x36c   :  { %v592_v7 = vpop.permute.xlu1 %591 }
 0x36d   :  { %v609_v9 = vrot.slane %v592_v7, %v2194_v55 }
 0x36f   :  { %v610_v10 = vsel %vm536_vm2, %v609_v9, %v605_v8 }
 0x370   :  { %v611_v11 = vsel %vm547_vm3, %v610_v10, %v601_v0  ;;  %v817_v0 = vld [vmem:[#allocation10 + $0x10] sm:$0xff]  ;;  %v818_v10 = vld [vmem:[#allocation10 + $0x18] sm:$0xff] }
 0x371   :  { %v613_v3 = vsel %vm550_vm4, %v611_v11, 0.0  ;;  %v1684_v11 = vpack.c.bf16 %v818_v10, %v817_v0 }
 0x372   :  { %614 = vadd.xlane.f32.xlu1 %v613_v3 }
 0x3a7   :  { %v1171_v12 = vpop.permute.xlu1 %1170 }
 0x3a8   :  { %v1184_v17 = vrot.slane %v1171_v12, %v2197_v62 }
 0x3ab   :  { %v1174_v13 = vpop.permute.xlu1 %1173 }
 0x3ac   :  { %v1188_v15 = vrot.slane %v1174_v13, %v2194_v55 }
 0x3ae   :  { %v1189_v20 = vsel %vm536_vm2, %v1188_v15, %v1184_v17  ;;  %v1406_v15 = vld [vmem:[#allocation10 + $0x30] sm:$0xff] }
 0x3af   :  { %v1177_v14 = vpop.permute.xlu1 %1176 }
 0x3b0   :  { %v1193_v18 = vrot.slane %v1177_v14, %v2197_v62 }
 0x3b3   :  { %v1180_v16 = vpop.permute.xlu1 %1179 }
 0x3b4   :  { %v1197_v19 = vrot.slane %v1180_v16, %v2194_v55  ;;  %v1407_v16 = vld [vmem:[#allocation10 + $0x38] sm:$0xff] }
 0x3b6   :  { %v1198_v21 = vsel %vm536_vm2, %v1197_v19, %v1193_v18  ;;  %v1696_v19 = vpack.c.bf16 %v1407_v16, %v1406_v15 }
 0x3b7   :  { %v1199_v22 = vsel %vm547_vm3, %v1198_v21, %v1189_v20 }
 0x3b8   :  { %v1201_v23 = vsel %vm550_vm4, %v1199_v22, 0.0 }
 0x3b9   :  { %1202 = vadd.xlane.f32.xlu0 %v1201_v23 }
 0x3ff   :  { %v615_v24 = vpop.xlane.xlu1 %614 }
 0x400   :  { %v624_v25 = vrot.slane %v615_v24, %v2080_v4  ;;  %v620_v28 = vrot.slane %v615_v24, %v2083_v5 }
 0x402   :  { %1752 = vrcp.f32 %v624_v25 }
 0x403   :  { %1754 = vrcp.f32 %v620_v28 }
 0x40c   :  { %v1753_v29 = vpop.eup %1752 }
 0x40d   :  { %v632_v30 = vmul.f32 %v1753_v29, %v1743_v40  ;;  %v631_v31 = vmul.f32 %v1753_v29, %v1741_v57  ;;  %v1755_v32 = vpop.eup %1754 }
 0x40e   :  { %v629_v33 = vmul.f32 %v1755_v32, %v2219_v39  ;;  %v628_v34 = vmul.f32 %v1755_v32, %v2217_v38 }
 0x40f   :  { %647 = vperm.xlu1 %1719, %v632_v30   ;;  %644 = vperm.xlu0 %1718, %v631_v31  }
 0x413   :  { %641 = vperm.xlu0 %1718, %v629_v33   ;;  %638 = vperm.xlu1 %1719, %v628_v34  }
 0x446   :  { %v1203_v35 = vpop.xlane.xlu0 %1202 }
 0x447   :  { %v1208_v58 = vrot.slane %v1203_v35, %v2083_v5  ;;  %v1212_v36 = vrot.slane %v1203_v35, %v2080_v4  ;;  %v815_v4 = vld [vmem:[#allocation10] sm:$0xff] }
 0x448   :  { %v1681_v49 = vpack.c.bf16 %v816_v60, %v815_v4 }
 0x449   :  { %1756 = vrcp.f32 %v1208_v58 }
 0x44a   :  { %1758 = vrcp.f32 %v1212_v36 }
 0x453   :  { %v1757_v37 = vpop.eup %1756 }
 0x454   :  { %v1217_v61 = vmul.f32 %v1757_v37, %v1747_v51  ;;  %v1216_v40 = vmul.f32 %v1757_v37, %v1745_v50  ;;  %v1759_v57 = vpop.eup %1758 }
 0x455   :  { %v1220_v41 = vmul.f32 %v1759_v57, %v1751_v53  ;;  %v1219_v42 = vmul.f32 %v1759_v57, %v1749_v52 }
 0x456   :  { %1229 = vperm.xlu0 %1718, %v1217_v61   ;;  %1226 = vperm.xlu1 %1719, %v1216_v40  }
 0x45a   :  { %1235 = vperm.xlu0 %1718, %v1220_v41   ;;  %1232 = vperm.xlu1 %1719, %v1219_v42  }
 0x48e   :  { %v648_v38 = vpop.permute.xlu1 %647  ;;  %v645_v39 = vpop.permute.xlu0 %644 }
 0x48f   :  { %v665_v43 = vrot.slane %v648_v38, %v2194_v55  ;;  %v661_v5 = vrot.slane %v645_v39, %v2197_v62 }
 0x491   :  { %v666_v44 = vsel %vm536_vm2, %v665_v43, %v661_v5 }
 0x492   :  { %1622 = vmatmul.mubr.msk.f32.vlgmr.msra.gmra.mrb[4].mxu0 %vm670_vm5, %v666_v44  ;;  %v642_v45 = vpop.permute.xlu0 %641  ;;  %v639_v46 = vpop.permute.xlu1 %638 }
 0x493   :  { %v656_v47 = vrot.slane %v642_v45, %v2194_v55  ;;  %v652_v48 = vrot.slane %v639_v46, %v2197_v62  ;;  %1688 = vmatpush3.bf16.msra.mxu0 %v2107_v27  ;;  %1639 = vmatprep.mubr.msk.f32.mxu0 %vm1934_vm0, %v1935_v2 }
 0x494   :  { %1689 = vmatprep.subr.bf16.mxu0 %v1933_v1 }
 0x495   :  { %v657_v50 = vsel %vm536_vm2, %v656_v47, %v652_v48 }
 0x496   :  { %1615 = vmatmul.mubr.msk.f32.vlgmr.msra.gmra.mrb[2].mxu1 %vm670_vm5, %v657_v50  ;;  %v667_v51 = vsel %vm547_vm3, %v666_v44, %v657_v50 }
 0x497   :  { %1682 = vmatpush3.bf16.msra.mxu1 %v1681_v49  ;;  %1632 = vmatprep.mubr.msk.f32.mxu1 %vm1934_vm0, %v1935_v2  ;;  %669 = vst.msk [vmem:[#allocation11] sm:$0x3] %vm550_vm4, %v667_v51 }
 0x498   :  { %1683 = vmatprep.subr.bf16.mxu1 %v1933_v1 }
 0x49b   :  { %1685 = vmatpush3.bf16.msra.mxu1 %v1684_v11 }
 0x49c   :  { %1692 = vmatprep.subr.bf16.mxu1 %v1933_v1 }
 0x4d5   :  { %v1230_v27 = vpop.permute.xlu0 %1229  ;;  %v1227_v52 = vpop.permute.xlu1 %1226 }
 0x4d6   :  { %v1244_v53 = vrot.slane %v1230_v27, %v2194_v55  ;;  %v1240_v54 = vrot.slane %v1227_v52, %v2197_v62 }
 0x4d8   :  { %v1245_v56 = vsel %vm536_vm2, %v1244_v53, %v1240_v54 }
 0x4d9   :  { %v1236_v59 = vpop.permute.xlu0 %1235  ;;  %1640 = vmatmul.mubr.msk.f32.vlgmr.msra.gmra.mrb[6].mxu0 %vm670_vm5, %v1245_v56  ;;  %v1233_v63 = vpop.permute.xlu1 %1232 }
 0x4da   :  { %v1253_v6 = vrot.slane %v1236_v59, %v2194_v55  ;;  %1691 = vmatpush3.bf16.msra.mxu0 %v2104_v26  ;;  %v1249_v7 = vrot.slane %v1233_v63, %v2197_v62  ;;  %1646 = vmatprep.mubr.msk.f32.mxu0 %vm1934_vm0, %v1935_v2  ;;  %v1404_v55 = vld [vmem:[#allocation10 + $0x20] sm:$0xff]  ;;  %v1405_v62 = vld [vmem:[#allocation10 + $0x28] sm:$0xff] }
 0x4db   :  { %v1693_v13 = vpack.c.bf16 %v1405_v62, %v1404_v55 }
 0x4dc   :  { %v1254_v8 = vsel %vm536_vm2, %v1253_v6, %v1249_v7 }
 0x4dd   :  { %1647 = vmatmul.mubr.msk.f32.vlgmr.msra.gmra.mrb[8].mxu0 %vm670_vm5, %v1254_v8  ;;  %v1255_v9 = vsel %vm547_vm3, %v1254_v8, %v1245_v56 }
 0x4de   :  { %1258 = vst.msk [vmem:[#allocation11 + $0x2] sm:$0x3] %vm550_vm4, %v1255_v9 }
 0x565   :  { %v811_v26 = vpop.f32.mrb[4].mxu0 }
 0x566   :  { %v1623_v3 = vpop.f32.mrb[5].mxu0  ;;  %v821_v12 = vrot.slane %v811_v26, 7 }
 0x569   :  { %v739_v14 = vpop.f32.mrb[2].mxu1 }
 0x56a   :  { %v822_v17 = vsel %vm547_vm3, %v821_v12, %v739_v14  ;;  %v1616_v18 = vpop.f32.mrb[3].mxu1 }
 0x56b   :  { %1633 = vmatmul.mubr.msk.f32.vlgmr.msra.gmra.mrb[4].mxu1 %vm120_vm1, %v822_v17 }
 0x56c   :  { %1694 = vmatpush3.bf16.msra.mxu1 %v1693_v13  ;;  %1657 = vmatprep.mubr.msk.f32.mxu1 %vm1934_vm0, %v1935_v2 }
 0x56d   :  { %1695 = vmatprep.subr.bf16.mxu1 %v1933_v1 }
 0x570   :  { %1697 = vmatpush3.bf16.msra.mxu1 %v1696_v19 }
 0x5ac   :  { %v1327_v20 = vpop.f32.mrb[6].mxu0 }
 0x5ad   :  { %v1641_v21 = vpop.f32.mrb[7].mxu0 }
 0x5b0   :  { %v1399_v22 = vpop.f32.mrb[8].mxu0 }
 0x5b1   :  { %v1410_v23 = vrot.slane %v1399_v22, 7  ;;  %v1648_v24 = vpop.f32.mrb[9].mxu0 }
 0x5b3   :  { %v1411_v25 = vsel %vm547_vm3, %v1410_v23, %v1327_v20 }
 0x5b4   :  { %1658 = vmatmul.mubr.msk.f32.vlgmr.msra.gmra.mrb[4].mxu1 %vm120_vm1, %v1411_v25 }
 0x5b5   :  { %1881 = shalt.err (!%p1878_p2)
}
 0x5b6   :  { %s1882_s20 = scalar_lea.hbm %s2325_s10, 64 }
 0x5b7   :  { %p1883_p3 = scmp.ne.s32.totalorder %s2325_s10, %s1882_s20  ;;  %p1886_p4 = scmp.lt.u32.totalorder %s1882_s20, %s2325_s10 }
 0x5b9   :  { %p1888_p5 = pnand %p1886_p4, %p1883_p3 }
 0x5bb   :  { %1891 = shalt.err (!%p1888_p5)
}
 0x5bc   :  { %1498 = dma.vmem_to_hbm [thread:$0]  %s1493_s1, 64, %s2325_s10, [#allocation4], %s1925_s27, %s1925_s27, %s1926_s28   ;;  %vm1485_vm6 = vcmask 254976  }
 0x5bd   :  { %v1526_v1 = vld [vmem:[%s2324_s9] ss:$0 sm:$0xff]  ;;  %s1940_s22 = smov [#allocation12]  }
 0x5be   :  { %s1505_s8 = sshll.u32 %s1940_s22, 4  ;;  %s1506_s8 = int_to_ptr.vmem [resolvable:$true] %s1505_s8 }
 0x5bf   :  { %s1892_s18 = scalar_lea.vmem %s1506_s8, 32  ;;  %p1897_p7 = scmp.lt.s32.totalorder %s1506_s8, %s1506_s8 }
 0x5c0   :  { %p1893_p6 = scmp.ne.s32.totalorder %s1506_s8, %s1892_s18  ;;  %p1898_p8 = scmp.lt.s32.totalorder %s1892_s18, %s1892_s18 }
 0x5c2   :  { %p1899_p9 = por %p1898_p8, %p1897_p7 }
 0x5c4   :  { %p1900_p10 = pnand %p1899_p9, %p1893_p6 }
 0x687   :  { %v1480_v2 = vpop.f32.mrb[4].mxu1 }
 0x688   :  { %v1698_v28 = vadd.f32 %v1526_v1, %v1480_v2  ;;  %v1659_v29 = vpop.f32.mrb[5].mxu1 }
 0x68a   :  { %1486 = vst.msk [vmem:[#allocation12] sm:$0x3] %vm1485_vm6, %v1698_v28 }
 0x68b   :  { %1903 = shalt.err (!%p1900_p10)
}
 0x68c   :  { %s1904_s28 = scalar_lea.hbm %s2326_s11, 32 }
 0x68d   :  { %p1905_p11 = scmp.ne.s32.totalorder %s2326_s11, %s1904_s28  ;;  %p1908_p12 = scmp.lt.u32.totalorder %s1904_s28, %s2326_s11 }
 0x68f   :  { %p1910_p13 = pnand %p1908_p12, %p1905_p11 }
 0x691   :  { %1913 = shalt.err (!%p1910_p13)
}
 0x692   :  { %1508 = dma.vmem_to_hbm [thread:$0]  %s1506_s8, 32, %s2326_s11, [#allocation13]  }
 0x693   :  { %1920 = dma.done.wait [#allocation4], 64  }
 0x694   :  { %1921 = vsyncadd [#allocation4], 4294967232 }
 0x695   :  { %1922 = dma.done.wait [#allocation13], 32  }
 0x696   :  { %1923 = vsyncadd [#allocation13], 4294967264 }
 0x697   :  { %1515 = vsyncpa [#allocation3], 1 }
 0x698   :  { %1516 = vsyncpa [#allocation6], 1 }
 0x699   :  { %1517 = vsyncpa [#allocation9], 1 }
 0x69a   :  { %1518 = vsyncpa [#allocation4], 1 }
 0x69b   :  { %1519 = vsyncpa [#allocation13], 1 }

</bundles_post_ra>
